<compile_context>
chip_gen: v6e
topology: v6e:2x2x1
jax: 0.10.0
libtpu: 0.0.40
codegen_flags: <defaults>
</compile_context>

<pallas_src>
import jax
import jax.numpy as jnp
from jax.experimental import pallas as pl
from jax.experimental.pallas import tpu as pltpu

D_IN, H1, H2, OUT = 28 * 28, 128, 64, 10        # logical sizes (784, 128, 64, 10)
D_IN_P, H2_P, OUT_P = 896, 128, 128             # lane-aligned padded sizes


def _round_up(x, m):
    return (x + m - 1) // m * m


def mlp_kernel(x_ref, w1_ref, b1_ref, w2_ref, b2_ref, w3_ref, b3_ref, o_ref):
    # x_ref: (TB, 896) bf16 tile; weights bf16, biases f32, output f32.
    x = x_ref[...]

    # Layer 1: (TB, 896) @ (896, 128) -> f32 acc, +b1, ReLU
    z1 = jnp.dot(x, w1_ref[...], preferred_element_type=jnp.float32) + b1_ref[...]
    a1 = jnp.maximum(z1, 0.0).astype(jnp.bfloat16)

    # Layer 2: (TB, 128) @ (128, 128) -> f32 acc, +b2, ReLU  (cols 64..127 are zero)
    z2 = jnp.dot(a1, w2_ref[...], preferred_element_type=jnp.float32) + b2_ref[...]
    a2 = jnp.maximum(z2, 0.0).astype(jnp.bfloat16)

    # Layer 3: (TB, 128) @ (128, 128) -> f32 logits slab (cols 10..127 are zero-pad)
    z3 = jnp.dot(a2, w3_ref[...], preferred_element_type=jnp.float32) + b3_ref[...]
    o_ref[...] = z3.astype(o_ref.dtype)


def mlp_basic_forward(x_nchw, params, *, batch_tile=512):
    """Forward pass equivalent to MLPBasic.forward.

    x_nchw: (B, 1, 28, 28) float32 (PyTorch NCHW layout)
    params: W1 (784,128), b1 (128,), W2 (128,64), b2 (64,), W3 (64,10), b3 (10,)
    returns: (B, 10) float32 logits
    """
    B = x_nchw.shape[0]
    x2d = x_nchw.reshape(B, D_IN).astype(jnp.float32)  # x.view(-1, 784)

    # Batch tile: large tiles amortize per-step overhead; if B is small the tile
    # simply covers the whole (8-row-rounded) batch so the block equals the array.
    tb = min(batch_tile, _round_up(B, 8))
    b_pad = _round_up(B, tb)
    grid = (b_pad // tb,)

    # --- Zero-padded, bf16-cast operands (padding is exact: zeros in activations
    #     match zeros in the corresponding weight rows/cols). -------------------
    x_p = (jnp.zeros((b_pad, D_IN_P), jnp.bfloat16)
           .at[:B, :D_IN].set(x2d.astype(jnp.bfloat16)))
    w1 = (jnp.zeros((D_IN_P, H1), jnp.bfloat16)
          .at[:D_IN, :].set(params["W1"].astype(jnp.bfloat16)))
    b1 = params["b1"].reshape(1, H1).astype(jnp.float32)
    w2 = (jnp.zeros((H1, H2_P), jnp.bfloat16)
          .at[:, :H2].set(params["W2"].astype(jnp.bfloat16)))
    b2 = (jnp.zeros((1, H2_P), jnp.float32)
          .at[:, :H2].set(params["b2"].reshape(1, H2).astype(jnp.float32)))
    w3 = (jnp.zeros((H2_P, OUT_P), jnp.bfloat16)
          .at[:H2, :OUT].set(params["W3"].astype(jnp.bfloat16)))
    b3 = (jnp.zeros((1, OUT_P), jnp.float32)
          .at[:, :OUT].set(params["b3"].reshape(1, OUT).astype(jnp.float32)))

    # Explicit VMEM budget: double-buffered input/output tiles + resident weights.
    vmem_bytes = (
        2 * tb * D_IN_P * 2                      # 2x bf16 input tile
        + 2 * tb * OUT_P * 4                     # 2x f32 output tile
        + (D_IN_P * H1 + H1 * H2_P + H2_P * OUT_P) * 2   # bf16 weights (resident)
        + (H1 + H2_P + OUT_P) * 4                # f32 biases
        + (4 << 20)                              # headroom
    )
    vmem_limit = int(min(64 << 20, max(vmem_bytes, 16 << 20)))

    out = pl.pallas_call(
        mlp_kernel,
        out_shape=jax.ShapeDtypeStruct((b_pad, OUT_P), jnp.float32),
        grid=grid,
        in_specs=[
            pl.BlockSpec((tb, D_IN_P), lambda i: (i, 0)),   # activation tile (pipelined)
            pl.BlockSpec((D_IN_P, H1), lambda i: (0, 0)),   # W1 resident
            pl.BlockSpec((1, H1), lambda i: (0, 0)),        # b1 resident
            pl.BlockSpec((H1, H2_P), lambda i: (0, 0)),     # W2 resident
            pl.BlockSpec((1, H2_P), lambda i: (0, 0)),      # b2 resident
            pl.BlockSpec((H2_P, OUT_P), lambda i: (0, 0)),  # W3 resident
            pl.BlockSpec((1, OUT_P), lambda i: (0, 0)),     # b3 resident
        ],
        out_specs=pl.BlockSpec((tb, OUT_P), lambda i: (i, 0)),  # lane-dense output slab
        compiler_params=pltpu.CompilerParams(
            dimension_semantics=("parallel",),
            vmem_limit_bytes=vmem_limit,
        ),
    )(x_p, w1, b1, w2, b2, w3, b3)

    return out[:B, :OUT]


def init_params(key):
    """Deterministic init mirroring MLPBasic.__init__ (randn * 0.01, zero biases)."""
    k1, k2, k3 = jax.random.split(key, 3)
    return {
        "W1": jax.random.normal(k1, (D_IN, H1), jnp.float32) * 0.01,
        "b1": jnp.zeros((H1,), jnp.float32),
        "W2": jax.random.normal(k2, (H1, H2), jnp.float32) * 0.01,
        "b2": jnp.zeros((H2,), jnp.float32),
        "W3": jax.random.normal(k3, (H2, OUT), jnp.float32) * 0.01,
        "b3": jnp.zeros((OUT,), jnp.float32),
    }


def ref_forward_bf16(x_nchw, params):
    """Plain-JAX reference with the same bf16-input / f32-accumulate math."""
    B = x_nchw.shape[0]
    x2d = x_nchw.reshape(B, D_IN).astype(jnp.bfloat16)
    z1 = jnp.dot(x2d, params["W1"].astype(jnp.bfloat16),
                 preferred_element_type=jnp.float32) + params["b1"]
    a1 = jnp.maximum(z1, 0.0).astype(jnp.bfloat16)
    z2 = jnp.dot(a1, params["W2"].astype(jnp.bfloat16),
                 preferred_element_type=jnp.float32) + params["b2"]
    a2 = jnp.maximum(z2, 0.0).astype(jnp.bfloat16)
    z3 = jnp.dot(a2, params["W3"].astype(jnp.bfloat16),
                 preferred_element_type=jnp.float32) + params["b3"]
    return z3


if __name__ == "__main__":
    key = jax.random.PRNGKey(0)
    k_params, k_x = jax.random.split(key)

    params = init_params(k_params)
    # MNIST-like batch, NCHW like PyTorch. B=100 with a 32-row tile exercises
    # the batch grid (4 steps) including a zero-padded final tile.
    B = 100
    x = jax.random.normal(k_x, (B, 1, 28, 28), jnp.float32)

    out = mlp_basic_forward(x, params, batch_tile=32)
    out = jax.block_until_ready(out)
    assert out.shape == (B, OUT)

    # Reference check (same bf16/f32 numerics as the kernel).
    ref = ref_forward_bf16(x, params)
    assert jnp.allclose(out, ref, atol=1e-5, rtol=1e-4), (
        float(jnp.max(jnp.abs(out - ref))))

    print("KERNEL_OK")
</pallas_src>

<mosaic_0001>
module attributes {stable_mosaic.version = 11 : i64} {
  func.func @mlp_kernel(%arg0: i32, %arg1: memref<32x896xbf16, #tpu.memory_space<vmem>>, %arg2: memref<896x128xbf16, #tpu.memory_space<vmem>>, %arg3: memref<1x128xf32, #tpu.memory_space<vmem>>, %arg4: memref<128x128xbf16, #tpu.memory_space<vmem>>, %arg5: memref<1x128xf32, #tpu.memory_space<vmem>>, %arg6: memref<128x128xbf16, #tpu.memory_space<vmem>>, %arg7: memref<1x128xf32, #tpu.memory_space<vmem>>, %arg8: memref<32x128xf32, #tpu.memory_space<vmem>>) attributes {dimension_semantics = [#tpu.dimension_semantics<parallel>], iteration_bounds = array<i64: 4>, scalar_prefetch = 0 : i64, scratch_operands = 0 : i64, tpu.core_type = #tpu.core_type<tc>, window_params = [{transform_indices = @transform_0, window_bounds = array<i64: 32, 896>}, {pipeline_mode = #tpu.pipeline_mode<synchronous>, transform_indices = @transform_1, window_bounds = array<i64: 896, 128>}, {pipeline_mode = #tpu.pipeline_mode<synchronous>, transform_indices = @transform_2, window_bounds = array<i64: 1, 128>}, {pipeline_mode = #tpu.pipeline_mode<synchronous>, transform_indices = @transform_3, window_bounds = array<i64: 128, 128>}, {pipeline_mode = #tpu.pipeline_mode<synchronous>, transform_indices = @transform_4, window_bounds = array<i64: 1, 128>}, {pipeline_mode = #tpu.pipeline_mode<synchronous>, transform_indices = @transform_5, window_bounds = array<i64: 128, 128>}, {pipeline_mode = #tpu.pipeline_mode<synchronous>, transform_indices = @transform_6, window_bounds = array<i64: 1, 128>}, {transform_indices = @transform_7, window_bounds = array<i64: 32, 128>}]} {
    %c0 = arith.constant 0 : index
    %c0_0 = arith.constant 0 : index
    %0 = vector.load %arg1[%c0, %c0_0] : memref<32x896xbf16, #tpu.memory_space<vmem>>, vector<32x896xbf16>
    %c0_1 = arith.constant 0 : index
    %c0_2 = arith.constant 0 : index
    %1 = vector.load %arg2[%c0_1, %c0_2] : memref<896x128xbf16, #tpu.memory_space<vmem>>, vector<896x128xbf16>
    %cst = arith.constant dense<0.000000e+00> : vector<32x128xf32>
    %2 = tpu.matmul %0, %1, %cst {dimension_numbers = #tpu.dot_dimension_numbers<[1], [0], [0], [1], [0, 0, 1, 1], [], []>} : vector<32x896xbf16>, vector<896x128xbf16>, vector<32x128xf32> -> vector<32x128xf32>
    %c0_3 = arith.constant 0 : index
    %c0_4 = arith.constant 0 : index
    %3 = vector.load %arg3[%c0_3, %c0_4] : memref<1x128xf32, #tpu.memory_space<vmem>>, vector<1x128xf32>
    %4 = vector.broadcast %3 : vector<1x128xf32> to vector<32x128xf32>
    %5 = arith.addf %2, %4 : vector<32x128xf32>
    %cst_5 = arith.constant 0.000000e+00 : f32
    %6 = vector.broadcast %cst_5 : f32 to vector<32x128xf32>
    %7 = arith.maximumf %5, %6 : vector<32x128xf32>
    %8 = arith.truncf %7 : vector<32x128xf32> to vector<32x128xbf16>
    %c0_6 = arith.constant 0 : index
    %c0_7 = arith.constant 0 : index
    %9 = vector.load %arg4[%c0_6, %c0_7] : memref<128x128xbf16, #tpu.memory_space<vmem>>, vector<128x128xbf16>
    %cst_8 = arith.constant dense<0.000000e+00> : vector<32x128xf32>
    %10 = tpu.matmul %8, %9, %cst_8 {dimension_numbers = #tpu.dot_dimension_numbers<[1], [0], [0], [1], [0, 0, 1, 1], [], []>} : vector<32x128xbf16>, vector<128x128xbf16>, vector<32x128xf32> -> vector<32x128xf32>
    %c0_9 = arith.constant 0 : index
    %c0_10 = arith.constant 0 : index
    %11 = vector.load %arg5[%c0_9, %c0_10] : memref<1x128xf32, #tpu.memory_space<vmem>>, vector<1x128xf32>
    %12 = vector.broadcast %11 : vector<1x128xf32> to vector<32x128xf32>
    %13 = arith.addf %10, %12 : vector<32x128xf32>
    %cst_11 = arith.constant 0.000000e+00 : f32
    %14 = vector.broadcast %cst_11 : f32 to vector<32x128xf32>
    %15 = arith.maximumf %13, %14 : vector<32x128xf32>
    %16 = arith.truncf %15 : vector<32x128xf32> to vector<32x128xbf16>
    %c0_12 = arith.constant 0 : index
    %c0_13 = arith.constant 0 : index
    %17 = vector.load %arg6[%c0_12, %c0_13] : memref<128x128xbf16, #tpu.memory_space<vmem>>, vector<128x128xbf16>
    %cst_14 = arith.constant dense<0.000000e+00> : vector<32x128xf32>
    %18 = tpu.matmul %16, %17, %cst_14 {dimension_numbers = #tpu.dot_dimension_numbers<[1], [0], [0], [1], [0, 0, 1, 1], [], []>} : vector<32x128xbf16>, vector<128x128xbf16>, vector<32x128xf32> -> vector<32x128xf32>
    %c0_15 = arith.constant 0 : index
    %c0_16 = arith.constant 0 : index
    %19 = vector.load %arg7[%c0_15, %c0_16] : memref<1x128xf32, #tpu.memory_space<vmem>>, vector<1x128xf32>
    %20 = vector.broadcast %19 : vector<1x128xf32> to vector<32x128xf32>
    %21 = arith.addf %18, %20 : vector<32x128xf32>
    %c0_17 = arith.constant 0 : index
    %c0_18 = arith.constant 0 : index
    %22 = vector.load %arg8[%c0_17, %c0_18] : memref<32x128xf32, #tpu.memory_space<vmem>>, vector<32x128xf32>
    tpu.vector_store %arg8[%c0_17, %c0_18], %21 {strides = array<i32>} : memref<32x128xf32, #tpu.memory_space<vmem>>, vector<32x128xf32>,
    return
  }
  func.func @transform_0(%arg0: i32) -> (i32, i32) {
    %c0_i32 = arith.constant 0 : i32
    %c0_i32_0 = arith.constant 0 : i32
    return %arg0, %c0_i32 : i32, i32
  }
  func.func @transform_1(%arg0: i32) -> (i32, i32) {
    %c0_i32 = arith.constant 0 : i32
    %c0_i32_0 = arith.constant 0 : i32
    %c0_i32_1 = arith.constant 0 : i32
    return %c0_i32, %c0_i32_0 : i32, i32
  }
  func.func @transform_2(%arg0: i32) -> (i32, i32) {
    %c0_i32 = arith.constant 0 : i32
    %c0_i32_0 = arith.constant 0 : i32
    %c0_i32_1 = arith.constant 0 : i32
    return %c0_i32, %c0_i32_0 : i32, i32
  }
  func.func @transform_3(%arg0: i32) -> (i32, i32) {
    %c0_i32 = arith.constant 0 : i32
    %c0_i32_0 = arith.constant 0 : i32
    %c0_i32_1 = arith.constant 0 : i32
    return %c0_i32, %c0_i32_0 : i32, i32
  }
  func.func @transform_4(%arg0: i32) -> (i32, i32) {
    %c0_i32 = arith.constant 0 : i32
    %c0_i32_0 = arith.constant 0 : i32
    %c0_i32_1 = arith.constant 0 : i32
    return %c0_i32, %c0_i32_0 : i32, i32
  }
  func.func @transform_5(%arg0: i32) -> (i32, i32) {
    %c0_i32 = arith.constant 0 : i32
    %c0_i32_0 = arith.constant 0 : i32
    %c0_i32_1 = arith.constant 0 : i32
    return %c0_i32, %c0_i32_0 : i32, i32
  }
  func.func @transform_6(%arg0: i32) -> (i32, i32) {
    %c0_i32 = arith.constant 0 : i32
    %c0_i32_0 = arith.constant 0 : i32
    %c0_i32_1 = arith.constant 0 : i32
    return %c0_i32, %c0_i32_0 : i32, i32
  }
  func.func @transform_7(%arg0: i32) -> (i32, i32) {
    %c0_i32 = arith.constant 0 : i32
    %c0_i32_0 = arith.constant 0 : i32
    return %arg0, %c0_i32 : i32, i32
  }
}

</mosaic_0001>

<bundles_post_ra>
// kernel: tpu_custom_call.1
= control target key start
LH: loop header
LB: loop body
LE: loop exit
PB: predicated region body
PF: predicated region fallthrough
CT: control target
= control target key end

     0   :  { %s2372_s0 = inlined_call_operand.hbm [shape: bf16[128,896], index: 0, kind: input, shape index: {}]   ;;  %s2373_s1 = inlined_call_operand.hbm [shape: bf16[896,128], index: 1, kind: input, shape index: {}]   ;;  %s2374_s2 = inlined_call_operand.vmem [shape: f32[1,128], index: 2, kind: input, shape index: {}]   ;;  %s2375_s3 = inlined_call_operand.hbm [shape: bf16[128,128], index: 3, kind: input, shape index: {}]   ;;  %s2376_s4 = inlined_call_operand.vmem [shape: f32[1,128], index: 4, kind: input, shape index: {}]   ;;  %s2377_s5 = inlined_call_operand.hbm [shape: bf16[128,128], index: 5, kind: input, shape index: {}]   ;;  %s2378_s6 = inlined_call_operand.vmem [shape: f32[1,128], index: 6, kind: input, shape index: {}]   ;;  %s2379_s7 = inlined_call_operand.hbm [shape: f32[128,128], index: 7, kind: output, shape index: {}]  }
   0x1   :  { %2384 = sst [smem:[#allocation15_spill]] %s2373_s1 }
   0x2   :  { %12 = vsyncpa [#allocation3], 0 }
   0x3   :  { %14 = vsyncpa [#allocation3 + $0x1], 0 }
   0x4   :  { %15 = vsyncpa [#allocation6], 0 }
   0x5   :  { %16 = vsyncpa [#allocation9], 0 }
   0x6   :  { %17 = vsyncpa [#allocation4], 0 }
   0x7   :  { %19 = vsyncpa [#allocation4 + $0x1], 0  ;;  %s2148_s24 = smov 0   ;;  %s2150_s25 = smov 0  }
   0x8   :  { %s2152_s26 = smov 0   ;;  %s2154_s27 = smov 0  }
   0x9 LB: > { %s2169_s28 = sadd.s32 4294967295, %s2095_s27   ;;  %s1456_s29 = sadd.s32 4294967294, %s2095_s27   ;;  %s2095_s27 = sphi %s2154_s27, %s2404_s27   ;;  %s2091_s26 = sphi %s2152_s26, %s2403_s26   ;;  %s2087_s25 = sphi %s2150_s25, %s2402_s25   ;;  %s2083_s24 = sphi %s2148_s24, %s2401_s24  }
   0xa   : > { %p45_p0 = scmp.ne.s32.totalorder %s2087_s25, %s2083_s24  ;;  %p2380_p1 = scmp.eq.s32.totalorder %s2169_s28, 0 }
   0xb   : > { %p201_p3 = scmp.eq.s32.totalorder %s1456_s29, 3  ;;  %p1457_p5 = scmp.ge.s32.totalorder %s2095_s27, 1 }
   0xc   : > { %p2178_p4 = por %p2380_p1, %p45_p0  ;;  %p208_p7 = scmp.lt.s32.totalorder %s2095_s27, 5 }
   0xd   : > { %p2183_p6 = por %p201_p3, %p45_p0  ;;  %s2097_s10 = smov [#allocation5]  }
   0xe   : > { %s2385_s30 = scalar_select %p2178_p4, 1, 0 }
   0xf   : > { %s2386_s8 = scalar_select %p2183_p6, 1, 0 }
  0x10   : > { %p2188_p8 = pnand %p1457_p5, %p208_p7  ;;  %s220_s11 = sshll.u32 %s2097_s10, 4  ;;  %s221_s11 = int_to_ptr.vmem [resolvable:$true] %s220_s11 }
  0x11   : > { %s2098_s13 = smov [#allocation7]   ;;  %s2099_s15 = smov [#allocation8]  }
  0x12   : > { %s2387_s9 = scalar_select %p2188_p8, 1, 0 }
  0x13   : > { %p1758_p9 = pneg %p2188_p8  ;;  %s236_s14 = sshll.u32 %s2098_s13, 4  ;;  %s237_s14 = int_to_ptr.vmem [resolvable:$true] %s236_s14 }
  0x14   : > { %s252_s16 = sshll.u32 %s2099_s15, 4  ;;  %s1928_s17 = scalar_lea.vmem %s221_s11, 7168  ;;  %s253_s16 = int_to_ptr.vmem [resolvable:$true] %s252_s16 }
  0x15   : > { %p2196_p10 = pnand %p1758_p9, %p2380_p1  ;;  %p1929_p12 = scmp.ne.s32.totalorder %s221_s11, %s1928_s17 }
  0x16   : > { %p1936_p3 = scmp.lt.s32.totalorder %s221_s11, %s221_s11  ;;  %p1937_p5 = scmp.lt.s32.totalorder %s1928_s17, %s1928_s17 }
  0x17   : > { %p1919_p11 = pneg %p2196_p10 }
  0x18   : > { %p1938_p7 = por %p1937_p5, %p1936_p3 }
  0x19   : > { %p1931_p13 = pnand %p1929_p12, %p1919_p11 }
  0x1b   : > { %p1932_p0 = pneg %p1931_p13 }
  0x1d   : > { %p1939_p9 = pnand %p1938_p7, %p1932_p0 }
  0x1f   : > { %1942 = shalt.err (!%p1939_p9)
}
  0x20   : > { %s2100_s18 = smov 64   ;;  %s2101_s19 = smov 4  }
  0x21   : > { %s2389_s1 = sld [smem:[#allocation15_spill]]  ;;  %s1954_s22 = scalar_lea.vmem %s237_s14, 1024 }
  0x22   : > { %p1955_p1 = scmp.ne.s32.totalorder %s237_s14, %s1954_s22  ;;  %p1962_p2 = scmp.lt.s32.totalorder %s237_s14, %s237_s14 }
  0x23   : > { %p1963_p6 = scmp.lt.s32.totalorder %s1954_s22, %s1954_s22 }
  0x24   : > { %p1957_p12 = pnand %p1955_p1, %p1919_p11 }
  0x25   : > { %p1964_p3 = por %p1963_p6, %p1962_p2 }
  0x26   : > { %p1958_p13 = pneg %p1957_p12 }
  0x27   : > { %1761 = dma.hbm_to_vmem [thread:$0]  (!%p2196_p10), %s2389_s1, 7168, %s221_s11, [#allocation6], %s2100_s18, %s2100_s18, %s2101_s19  }
  0x28   : > { %p1965_p0 = pnand %p1964_p3, %p1958_p13 }
  0x2a   : > { %1968 = shalt.err (!%p1965_p0)
}
  0x2b   : > { %1764 = dma.hbm_to_vmem [thread:$0]  (!%p2196_p10), %s2375_s3, 1024, %s237_s14, [#allocation6], %s2100_s18, %s2100_s18, %s2101_s19  }
  0x2c   : > { %s1980_s10 = scalar_lea.vmem %s253_s16, 1024  ;;  %p1988_p9 = scmp.lt.s32.totalorder %s253_s16, %s253_s16 }
  0x2d   : > { %p1981_p5 = scmp.ne.s32.totalorder %s253_s16, %s1980_s10  ;;  %p1989_p12 = scmp.lt.s32.totalorder %s1980_s10, %s1980_s10 }
  0x2f   : > { %p1983_p7 = pnand %p1981_p5, %p1919_p11  ;;  %p1990_p4 = por %p1989_p12, %p1988_p9 }
  0x31   : > { %p1984_p1 = pneg %p1983_p7 }
  0x33   : > { %p1991_p2 = pnand %p1990_p4, %p1984_p1 }
  0x35   : > { %1994 = shalt.err (!%p1991_p2)
}
  0x36   : > { %1767 = dma.hbm_to_vmem [thread:$0]  (!%p2196_p10), %s2377_s5, 1024, %s253_s16, [#allocation9], %s2100_s18, %s2100_s18, %s2101_s19  }
  0x37   : > { %s2227_s14 = sadd.s32 1, %s2095_s27   ;;  %s32_s12 = sadd.s32 1, %s2091_s26 }
  0x38   : > { %s29_s15 = ssub.s32 %s2095_s27, %s2227_s14  ;;  %p39_p6 = scmp.ne.s32.totalorder %s2091_s26, %s2087_s25 }
  0x39   : > { %p30_p4 = scmp.eq.s32.totalorder %s29_s15, 0  ;;  %p40_p11 = scmp.eq.s32.totalorder %s2095_s27, 0 }
  0x3a   : > { %p1779_p13 = scmp.lt.s32.totalorder %s2095_s27, 4  ;;  %p2390_p0 = scmp.eq.s32.totalorder %s2169_s28, 3 }
  0x3b   : > { %s2237_s17 = scalar_select %p30_p4, %s2091_s26, %s32_s12  }
  0x3c   : > { %p41_p3 = por %p40_p11, %p39_p6  ;;  %p2241_p5 = por %p2390_p0, %p39_p6 }
  0x3d   : > { %s269_s21 = sand.u32 1, %s2091_s26   ;;  %s1740_s22 = smul.u32 1792, %s2095_s27 }
  0x3e   : > { %s2391_s20 = scalar_select %p2241_p5, 1, 0 }
  0x3f   : > { %s1739_s16 = smul.u32 112, %s269_s21  ;;  %s2250_s23 = scalar_lea.hbm %s2372_s0, %s1740_s22 }
  0x40   : > { %p2252_p10 = pnand %p1779_p13, %p41_p3  ;;  %s2258_s13 = scalar_lea.sflag [#allocation3], %s269_s21 }
  0x41   : > { %s273_s10 = scalar_lea.vmem [#allocation2], %s1739_s16  ;;  %s1995_s15 = scalar_lea.hbm %s2250_s23, 1792 }
  0x42   : > { %s281_s11 = sshll.u32 %s273_s10, 4  ;;  %p1996_p7 = scmp.ne.s32.totalorder %s2250_s23, %s1995_s15  ;;  %s2256_s11 = int_to_ptr.vmem [resolvable:$true] %s281_s11 }
  0x43   : > { %p1997_p1 = pneg %p2252_p10  ;;  %s2000_s18 = scalar_lea.hbm %s2372_s0, 7168 }
  0x44   : > { %p2001_p2 = scmp.lt.s32.totalorder %s2250_s23, %s2372_s0  ;;  %p2002_p4 = scmp.lt.s32.totalorder %s2000_s18, %s1995_s15 }
  0x45   : > { %p1998_p9 = pnand %p1997_p1, %p1996_p7 }
  0x46   : > { %p2003_p6 = por %p2002_p4, %p2001_p2 }
  0x47   : > { %p1999_p12 = pneg %p1998_p9 }
  0x49   : > { %p2004_p11 = pnand %p2003_p6, %p1999_p12 }
  0x4b   : > { %2007 = shalt.err (!%p2004_p11)
}
  0x4c   : > { %s2008_s21 = scalar_lea.vmem %s2256_s11, 1792  ;;  %s2102_s16 = smov [#allocation2]  }
  0x4d   : > { %p2009_p13 = scmp.ne.s32.totalorder %s2256_s11, %s2008_s21  ;;  %s2013_s10 = sshll.u32 %s2102_s16, 4  ;;  %s2014_s10 = int_to_ptr.vmem [resolvable:$false] %s2013_s10 }
  0x4e   : > { %s2015_s12 = scalar_lea.vmem %s2014_s10, 3584  ;;  %p2016_p7 = scmp.lt.s32.totalorder %s2256_s11, %s2014_s10 }
  0x4f   : > { %p2011_p3 = pnand %p2009_p13, %p1997_p1  ;;  %p2017_p9 = scmp.lt.s32.totalorder %s2015_s12, %s2008_s21 }
  0x51   : > { %p2012_p0 = pneg %p2011_p3  ;;  %p2018_p5 = por %p2017_p9, %p2016_p7 }
  0x53   : > { %p2019_p8 = pnand %p2018_p5, %p2012_p0 }
  0x55   : > { %2022 = shalt.err (!%p2019_p8)
}
  0x56   : > { %s2103_s1 = smov 448   ;;  %s2104_s15 = smov 28  }
  0x57   : > { %1771 = dma.hbm_to_vmem [thread:$0]  (!%p2252_p10), %s2250_s23, 1792, %s2256_s11, %s2258_s13, %s2103_s1, %s2103_s1, %s2104_s15  }
  0x58   : > { %p2393_p1 = scmp.ne.s32.totalorder %s2387_s9, 0 }
  0x59   : > { %s2282_s22 = sand.u32 (!%p2393_p1), 1, %s2087_s25   ;;  %p2394_p8 = scmp.ne.s32.totalorder (!%p2393_p1), %s2385_s30, 0 }
  0x5a   : > { %293 = sbr.rel (%p2393_p1) target bundleno = 805 (0x325), region = 48  ;;  %s296_s19 = scalar_lea.sflag (!%p2393_p1), [#allocation3], %s2282_s22 }
  0x5b   : > { %s1741_s18 = smul.u32 (!%p2393_p1), 112, %s2282_s22 }
  0x5d   : > { %s2286_s21 = scalar_lea.vmem (!%p2393_p1), [#allocation2], %s1741_s18 }
  0x5f   : > { %2066 = dma.done.wait (%p2394_p8), %s296_s19, 1792  }
  0x60   : > { %2068 = vsyncadd (%p2394_p8), %s296_s19, 4294965504  ;;  %p2395_p5 = scmp.eq.s32.totalorder %s2169_s28, 0 }
  0x62   : > { %2070 = dma.done.wait (%p2395_p5), [#allocation6], 8192   ;;  %p2396_p10 = pmov %p2395_p5 }
  0x63   : > { %p2397_p12 = pmov %p2395_p5 }
  0x64   : > { %2072 = vsyncadd (%p2396_p10), [#allocation6], 4294959104 }
  0x65   : > { %2074 = dma.done.wait (%p2397_p12), [#allocation9], 1024   ;;  %p2398_p2 = pmov %p2395_p5 }
  0x66   : > { %v1825_v0 = vld [vmem:[#allocation5 + $0x78] sm:$0xff]   ;;  %v1829_v4 = vld [vmem:[#allocation5 + $0x70] sm:$0xff]   ;;  %v1833_v8 = vld [vmem:[#allocation5 + $0x68] sm:$0xff]   ;;  %s1469_s11 = sshll.u32 %s2282_s22, 5  ;;  %s1564_s1 = sshll.u32 %s2169_s28, 9 }
  0x67   : > { %2076 = vsyncadd (%p2398_p2), [#allocation9], 4294966272  ;;  %v1826_v1 = vld [vmem:[#allocation5 + $0x38] sm:$0xff]   ;;  %1565 = vmatprep.subr.bf16.mxu0 %v1825_v0  ;;  %v1830_v5 = vld [vmem:[#allocation5 + $0x30] sm:$0xff]   ;;  %s341_s10 = scalar_lea.vmem [#allocation10], %s1469_s11  ;;  %s2330_s19 = scalar_lea.hbm %s2379_s7, %s1564_s1 }
  0x68   : > { %v1827_v2 = vld [vmem:[#allocation5 + $0xf8] sm:$0xff]   ;;  %1566 = vmatpush3.bf16.msra.mxu0 %v1826_v1  ;;  %v1831_v6 = vld [vmem:[#allocation5 + $0xf0] sm:$0xff]   ;;  %v1834_v9 = vld [vmem:[#allocation5 + $0x28] sm:$0xff]   ;;  %s1354_s12 = sshll.u32 %s341_s10, 4  ;;  %p2399_p6 = scmp.ne.s32.totalorder %s2391_s20, 0  ;;  %s2325_s12 = int_to_ptr.vmem [resolvable:$true] %s1354_s12 }
  0x69   : > { %v1828_v3 = vld [vmem:[#allocation5 + $0xb8] sm:$0xff]   ;;  %1593 = vmatprep.subr.bf16.mxu1 %v1827_v2  ;;  %1567 = vmatprep.subr.bf16.mxu0 %v1829_v4  ;;  %v1832_v7 = vld [vmem:[#allocation5 + $0xb0] sm:$0xff]   ;;  %v1835_v10 = vld [vmem:[#allocation5 + $0xe8] sm:$0xff]   ;;  %s2023_s30 = scalar_lea.vmem %s2325_s12, 512  ;;  %s2105_s28 = smov [#allocation10]  }
  0x6a   : > { %1594 = vmatpush3.bf16.msra.mxu1 %v1828_v3  ;;  %v1836_v11 = vld [vmem:[#allocation5 + $0xa8] sm:$0xff]   ;;  %v1837_v12 = vld [vmem:[#allocation5 + $0x60] sm:$0xff]   ;;  %v1841_v16 = vld [vmem:[#allocation5 + $0x58] sm:$0xff]   ;;  %p2024_p4 = scmp.ne.s32.totalorder %s2325_s12, %s2023_s30  ;;  %s2027_s9 = sshll.u32 %s2105_s28, 4  ;;  %s2028_s9 = int_to_ptr.vmem [resolvable:$false] %s2027_s9 }
  0x6b   : > { %1595 = vmatprep.subr.bf16.mxu1 %v1831_v6  ;;  %v1838_v13 = vld [vmem:[#allocation5 + $0x20] sm:$0xff]   ;;  %v1842_v17 = vld [vmem:[#allocation5 + $0x18] sm:$0xff]   ;;  %v1845_v20 = vld [vmem:[#allocation5 + $0x50] sm:$0xff]   ;;  %s2029_s23 = scalar_lea.vmem %s2028_s9, 1024  ;;  %p2030_p3 = scmp.lt.s32.totalorder %s2325_s12, %s2028_s9 }
  0x6c   : > { %1568 = vmatpush3.bf16.msra.mxu0 %v1830_v5  ;;  %v1839_v14 = vld [vmem:[#allocation5 + $0xe0] sm:$0xff]   ;;  %v1843_v18 = vld [vmem:[#allocation5 + $0xd8] sm:$0xff]   ;;  %v1846_v21 = vld [vmem:[#allocation5 + $0x10] sm:$0xff]   ;;  %p2025_p11 = pnand %p2024_p4, %p2399_p6  ;;  %p2031_p0 = scmp.lt.s32.totalorder %s2029_s23, %s2023_s30 }
  0x6d   : > { %1569 = vmatprep.subr.bf16.mxu0 %v1833_v8  ;;  %v1840_v15 = vld [vmem:[#allocation5 + $0xa0] sm:$0xff]   ;;  %v1844_v19 = vld [vmem:[#allocation5 + $0x98] sm:$0xff]   ;;  %v1847_v22 = vld [vmem:[#allocation5 + $0xd0] sm:$0xff]  }
  0x6e   : > { %1596 = vmatpush3.bf16.msra.mxu1 %v1832_v7  ;;  %v1848_v23 = vld [vmem:[#allocation5 + $0x90] sm:$0xff]   ;;  %v1849_v24 = vld [vmem:[#allocation5 + $0x48] sm:$0xff]   ;;  %v1853_v28 = vld [vmem:[#allocation5 + $0x40] sm:$0xff]   ;;  %p2026_p13 = pneg %p2025_p11  ;;  %p2032_p7 = por %p2031_p0, %p2030_p3 }
  0x6f   : > { %1597 = vmatprep.subr.bf16.mxu1 %v1835_v10  ;;  %v1850_v25 = vld [vmem:[#allocation5 + $0x8] sm:$0xff]   ;;  %v1854_v29 = vld [vmem:[#allocation5] sm:$0xff]   ;;  %v1860_v34 = vld [vmem:[#allocation5 + $0x178] sm:$0xff]  }
  0x70   : > { %1570 = vmatpush3.bf16.msra.mxu0 %v1834_v9  ;;  %v1851_v26 = vld [vmem:[#allocation5 + $0xc8] sm:$0xff]   ;;  %v1855_v30 = vld [vmem:[#allocation5 + $0xc0] sm:$0xff]   ;;  %v1864_v37 = vld [vmem:[#allocation5 + $0x138] sm:$0xff]   ;;  %p2033_p9 = pnand %p2032_p7, %p2026_p13 }
  0x71   : > { %1571 = vmatprep.subr.bf16.mxu0 %v1837_v12  ;;  %v1852_v27 = vld [vmem:[#allocation5 + $0x88] sm:$0xff]   ;;  %v1858_v32 = vld [vmem:[%s2286_s21 + $0x4] ss:$28 sps:$4 sm:$0xff]   ;;  %v1866_v39 = vld [vmem:[#allocation5 + $0x1b8] sm:$0xff]  }
  0x72   : > { %1598 = vmatpush3.bf16.msra.mxu1 %v1836_v11  ;;  %v1856_v31 = vld [vmem:[%s2286_s21] ss:$28 sps:$4 sm:$0xff]   ;;  %920 = vmatprep.mubr.bf16.mxu0 %v1858_v32  ;;  %v1861_v35 = vld [vmem:[%s2286_s21 + $0x8] ss:$28 sps:$4 sm:$0xff]   ;;  %v1879_v51 = vld [vmem:[%s2286_s21 + $0x38] ss:$28 sps:$4 sm:$0xff]  }
  0x73   : > { %1599 = vmatprep.subr.bf16.mxu1 %v1839_v14  ;;  %v1859_v33 = vld [vmem:[#allocation5 + $0x80] sm:$0xff]   ;;  %v1863_v36 = vld [vmem:[%s2286_s21 + $0xc] ss:$28 sps:$4 sm:$0xff]   ;;  %v1865_v38 = vld [vmem:[#allocation5 + $0x170] sm:$0xff]  }
  0x74   : > { %1572 = vmatpush3.bf16.msra.mxu0 %v1838_v13  ;;  %969 = vmatprep.mubr.bf16.mxu1 %v1863_v36  ;;  %v1867_v40 = vld [vmem:[#allocation5 + $0x130] sm:$0xff]   ;;  %v1868_v41 = vld [vmem:[#allocation5 + $0x168] sm:$0xff]   ;;  %v1871_v44 = vld [vmem:[#allocation5 + $0x160] sm:$0xff]  }
  0x75   : > { %1573 = vmatprep.subr.bf16.mxu0 %v1841_v16  ;;  %v1869_v42 = vld [vmem:[#allocation5 + $0x1b0] sm:$0xff]   ;;  %v1870_v43 = vld [vmem:[#allocation5 + $0x128] sm:$0xff]   ;;  %v1873_v46 = vld [vmem:[#allocation5 + $0x120] sm:$0xff]  }
  0x76   : > { %1600 = vmatpush3.bf16.msra.mxu1 %v1840_v15  ;;  %v1872_v45 = vld [vmem:[#allocation5 + $0x1a8] sm:$0xff]   ;;  %v1874_v47 = vld [vmem:[#allocation5 + $0x158] sm:$0xff]   ;;  %v1875_v48 = vld [vmem:[#allocation5 + $0x1a0] sm:$0xff]  }
  0x77   : > { %1601 = vmatprep.subr.bf16.mxu1 %v1843_v18  ;;  %v1876_v49 = vld [vmem:[%s2286_s21 + $0x3c] ss:$28 sps:$4 sm:$0xff]   ;;  %v1880_v52 = vld [vmem:[%s2286_s21 + $0x44] ss:$28 sps:$4 sm:$0xff]   ;;  %v1894_v63 = vld [vmem:[%s2286_s21 + $0x14] ss:$28 sps:$4 sm:$0xff]  }
  0x78   : > { %1574 = vmatpush3.bf16.msra.mxu0 %v1842_v17  ;;  %v1878_v50 = vld [vmem:[#allocation5 + $0x118] sm:$0xff]   ;;  %v1883_v54 = vld [vmem:[#allocation5 + $0x150] sm:$0xff]   ;;  %v1886_v57 = vld [vmem:[#allocation5 + $0x148] sm:$0xff]  }
  0x79   : > { %1575 = vmatprep.subr.bf16.mxu0 %v1845_v20  ;;  %v1882_v53 = vld [vmem:[%s2286_s21 + $0x40] ss:$28 sps:$4 sm:$0xff]   ;;  %v1896_v1 = vld [vmem:[%s2286_s21 + $0x18] ss:$28 sps:$4 sm:$0xff]   ;;  %v1892_v2 = vld [vmem:[%s2286_s21 + $0x10] ss:$28 sps:$4 sm:$0xff]  }
  0x7a   : > { %1602 = vmatpush3.bf16.msra.mxu1 %v1844_v19  ;;  %v1884_v55 = vld [vmem:[#allocation5 + $0x198] sm:$0xff]   ;;  %v1885_v56 = vld [vmem:[#allocation5 + $0x110] sm:$0xff]   ;;  %v1888_v59 = vld [vmem:[#allocation5 + $0x108] sm:$0xff]  }
  0x7b   : > { %1603 = vmatprep.subr.bf16.mxu1 %v1847_v22  ;;  %v1887_v58 = vld [vmem:[#allocation5 + $0x190] sm:$0xff]   ;;  %v1889_v60 = vld [vmem:[#allocation5 + $0x140] sm:$0xff]   ;;  %v1890_v61 = vld [vmem:[#allocation5 + $0x188] sm:$0xff]  }
  0x7c   : > { %1576 = vmatpush3.bf16.msra.mxu0 %v1846_v21  ;;  %v1891_v62 = vld [vmem:[#allocation5 + $0x100] sm:$0xff]   ;;  %v1898_v3 = vld [vmem:[%s2286_s21 + $0x4c] ss:$28 sps:$4 sm:$0xff]   ;;  %v1902_v7 = vld [vmem:[#allocation7 + $0x30] sm:$0xff]  }
  0x7d   : > { %1577 = vmatprep.subr.bf16.mxu0 %v1849_v24  ;;  %v1895_v0 = vld [vmem:[#allocation5 + $0x180] sm:$0xff]   ;;  %v1901_v6 = vld [vmem:[#allocation7 + $0x38] sm:$0xff]   ;;  %v1903_v8 = vld [vmem:[#allocation7 + $0x28] sm:$0xff]  }
  0x7e   : > { %1604 = vmatpush3.bf16.msra.mxu1 %v1848_v23  ;;  %v1897_v4 = vld [vmem:[%s2286_s21 + $0x50] ss:$28 sps:$4 sm:$0xff]   ;;  %v1900_v5 = vld [vmem:[%s2286_s21 + $0x48] ss:$28 sps:$4 sm:$0xff]   ;;  %s1341_s21 = scalar_lea.sflag [#allocation4], %s2282_s22 }
  0x7f   : > { %1605 = vmatprep.subr.bf16.mxu1 %v1851_v26  ;;  %v1904_v9 = vld [vmem:[#allocation7 + $0x20] sm:$0xff]   ;;  %v1905_v10 = vld [vmem:[#allocation7 + $0x18] sm:$0xff]   ;;  %v1906_v11 = vld [vmem:[#allocation7 + $0x10] sm:$0xff]  }
  0x80   : > { %1578 = vmatpush3.bf16.msra.mxu0 %v1850_v25  ;;  %v1907_v12 = vld [vmem:[#allocation7 + $0x8] sm:$0xff]   ;;  %v1908_v13 = vld [vmem:[#allocation7] sm:$0xff]   ;;  %v1909_v14 = vld [vmem:[#allocation8 + $0x38] sm:$0xff]  }
  0x81   : > { %1579 = vmatprep.subr.bf16.mxu0 %v1853_v28  ;;  %v1910_v15 = vld [vmem:[#allocation8 + $0x30] sm:$0xff]   ;;  %v1911_v16 = vld [vmem:[#allocation8 + $0x28] sm:$0xff]   ;;  %v1912_v17 = vld [vmem:[#allocation8 + $0x20] sm:$0xff]  }
  0x82   : > { %1606 = vmatpush3.bf16.msra.mxu1 %v1852_v27  ;;  %v1913_v18 = vld [vmem:[#allocation8 + $0x18] sm:$0xff]  }
  0x83   : > { %1607 = vmatprep.subr.bf16.mxu1 %v1855_v30 }
  0x84   : > { %1580 = vmatpush3.bf16.msra.mxu0 %v1854_v29 }
  0x85   : > { %1621 = vmatprep.subr.bf16.mxu0 %v1860_v34 }
  0x86   : > { %1608 = vmatpush3.bf16.msra.mxu1 %v1859_v33  ;;  %v1470_v33 = vld [vmem:[%s2374_s2] ss:$0 sm:$0xff] }
  0x87   : > { %921 = vmatmul.mubr.bf16.vlgmr.msra.gmra.mxu0 %v1856_v31  ;;  %1679 = vmatprep.subr.bf16.mxu1 %v1866_v39 }
  0x88   : > { %1622 = vmatpush3.bf16.msra.mxu0 %v1864_v37  ;;  %928 = vmatprep.mubr.bf16.mxu0 %v1876_v49 }
  0x89   : > { %970 = vmatmul.mubr.bf16.vlgmr.msra.gmra.mxu1 %v1861_v35  ;;  %1623 = vmatprep.subr.bf16.mxu0 %v1865_v38 }
  0x8a   : > { %1680 = vmatpush3.bf16.msra.mxu1 %v1866_v39  ;;  %977 = vmatprep.mubr.bf16.mxu1 %v1880_v52 }
  0x8b   : > { %1681 = vmatprep.subr.bf16.mxu1 %v1869_v42 }
  0x8c   : > { %1624 = vmatpush3.bf16.msra.mxu0 %v1867_v40 }
  0x8d   : > { %1625 = vmatprep.subr.bf16.mxu0 %v1868_v41 }
  0x8e   : > { %1682 = vmatpush3.bf16.msra.mxu1 %v1869_v42 }
  0x8f   : > { %1683 = vmatprep.subr.bf16.mxu1 %v1872_v45  ;;  %929 = vmatmul.mubr.bf16.gmra.mxu0 %v1879_v51 }
  0x90   : > { %1626 = vmatpush3.bf16.msra.mxu0 %v1870_v43  ;;  %1018 = vmatprep.mubr.bf16.mxu0 %v1894_v63 }
  0x91   : > { %1627 = vmatprep.subr.bf16.mxu0 %v1871_v44  ;;  %978 = vmatmul.mubr.bf16.gmra.mxu1 %v1882_v53 }
  0x92   : > { %1684 = vmatpush3.bf16.msra.mxu1 %v1872_v45  ;;  %1695 = vmatprep.mubr.bf16.mxu1 %v1896_v1 }
  0x93   : > { %1685 = vmatprep.subr.bf16.mxu1 %v1875_v48 }
  0x94   : > { %1628 = vmatpush3.bf16.msra.mxu0 %v1873_v46 }
  0x95   : > { %1629 = vmatprep.subr.bf16.mxu0 %v1874_v47 }
  0x96   : > { %1686 = vmatpush3.bf16.msra.mxu1 %v1875_v48 }
  0x97   : > { %1687 = vmatprep.subr.bf16.mxu1 %v1884_v55 }
  0x98   : > { %1630 = vmatpush3.bf16.msra.mxu0 %v1878_v50 }
  0x99   : > { %1631 = vmatprep.subr.bf16.mxu0 %v1883_v54 }
  0x9a   : > { %1688 = vmatpush3.bf16.msra.mxu1 %v1884_v55 }
  0x9b   : > { %1689 = vmatprep.subr.bf16.mxu1 %v1887_v58 }
  0x9c   : > { %1632 = vmatpush3.bf16.msra.mxu0 %v1885_v56 }
  0x9d   : > { %1633 = vmatprep.subr.bf16.mxu0 %v1886_v57 }
  0x9e   : > { %1690 = vmatpush3.bf16.msra.mxu1 %v1887_v58 }
  0x9f   : > { %1691 = vmatprep.subr.bf16.mxu1 %v1890_v61 }
  0xa0   : > { %1634 = vmatpush3.bf16.msra.mxu0 %v1888_v59 }
  0xa1   : > { %1635 = vmatprep.subr.bf16.mxu0 %v1889_v60 }
  0xa2   : > { %1692 = vmatpush3.bf16.msra.mxu1 %v1890_v61 }
  0xa3   : > { %1693 = vmatprep.subr.bf16.mxu1 %v1895_v0 }
  0xa4   : > { %1636 = vmatpush3.bf16.msra.mxu0 %v1891_v62 }
  0xa5   : > { %1699 = vmatprep.subr.bf16.mxu0 %v1901_v6 }
  0xa6   : > { %1694 = vmatpush3.bf16.msra.mxu1 %v1895_v0 }
  0xa7   : > { %1019 = vmatmul.mubr.bf16.vlgmr.msra.gmra.mxu0 %v1892_v2  ;;  %1719 = vmatprep.subr.bf16.mxu1 %v1909_v14 }
  0xa8   : > { %1026 = vmatprep.mubr.bf16.mxu0 %v1898_v3  ;;  %1700 = vmatpush3.bf16.msra.mxu0 %v1901_v6 }
  0xa9   : > { %1696 = vmatmul.mubr.bf16.vlgmr.msra.gmra.mxu1 %v1897_v4  ;;  %1701 = vmatprep.subr.bf16.mxu0 %v1902_v7 }
  0xaa   : > { %1720 = vmatpush3.bf16.msra.mxu1 %v1909_v14 }
  0xab   : > { %1721 = vmatprep.subr.bf16.mxu1 %v1910_v15 }
  0xac   : > { %1702 = vmatpush3.bf16.msra.mxu0 %v1902_v7 }
  0xad   : > { %1703 = vmatprep.subr.bf16.mxu0 %v1903_v8 }
  0xae   : > { %1722 = vmatpush3.bf16.msra.mxu1 %v1910_v15 }
  0xaf   : > { %1027 = vmatmul.mubr.bf16.gmra.mxu0 %v1900_v5  ;;  %1723 = vmatprep.subr.bf16.mxu1 %v1911_v16 }
  0xb0   : > { %1704 = vmatpush3.bf16.msra.mxu0 %v1903_v8 }
  0xb1   : > { %1705 = vmatprep.subr.bf16.mxu0 %v1904_v9 }
  0xb2   : > { %1724 = vmatpush3.bf16.msra.mxu1 %v1911_v16 }
  0xb3   : > { %1725 = vmatprep.subr.bf16.mxu1 %v1912_v17 }
  0xb4   : > { %1706 = vmatpush3.bf16.msra.mxu0 %v1904_v9 }
  0xb5   : > { %1707 = vmatprep.subr.bf16.mxu0 %v1905_v10 }
  0xb6   : > { %1726 = vmatpush3.bf16.msra.mxu1 %v1912_v17 }
  0xb7   : > { %1727 = vmatprep.subr.bf16.mxu1 %v1913_v18 }
  0xb8   : > { %1708 = vmatpush3.bf16.msra.mxu0 %v1905_v10 }
  0xb9   : > { %1709 = vmatprep.subr.bf16.mxu0 %v1906_v11 }
  0xba   : > { %1728 = vmatpush3.bf16.msra.mxu1 %v1913_v18  ;;  %v1914_v18 = vld [vmem:[#allocation8 + $0x10] sm:$0xff]  }
  0xbb   : > { %1729 = vmatprep.subr.bf16.mxu1 %v1914_v18 }
  0xbc   : > { %1710 = vmatpush3.bf16.msra.mxu0 %v1906_v11 }
  0xbd   : > { %1711 = vmatprep.subr.bf16.mxu0 %v1907_v12 }
  0xbe   : > { %1730 = vmatpush3.bf16.msra.mxu1 %v1914_v18 }
  0xc0   : > { %1712 = vmatpush3.bf16.msra.mxu0 %v1907_v12 }
  0xc1   : > { %1713 = vmatprep.subr.bf16.mxu0 %v1908_v13 }
  0xc4   : > { %1714 = vmatpush3.bf16.msra.mxu0 %v1908_v13 }
 0x147   : > { %v1581_v19 = vpop.f32.mrf.mxu0 }
 0x149   : > { %v1609_v20 = vpop.f32.mrf.mxu1  ;;  %v1582_v21 = vpop.f32.mrf.mxu0 }
 0x14a   : > { %v1583_v32 = vadd.f32 %v1582_v21, %v1581_v19  ;;  %v1915_v19 = vld [vmem:[#allocation8 + $0x8] sm:$0xff]  }
 0x14b   : > { %v1610_v22 = vpop.f32.mrf.mxu1  ;;  %v1584_v23 = vpop.f32.mrf.mxu0  ;;  %1731 = vmatprep.subr.bf16.mxu1 %v1915_v19 }
 0x14c   : > { %v923_v36 = vadd.f32 %v1583_v32, %v1470_v33  ;;  %v1611_v37 = vadd.f32 %v1610_v22, %v1609_v20  ;;  %1732 = vmatpush3.bf16.msra.mxu1 %v1915_v19  ;;  %v1916_v20 = vld [vmem:[#allocation8] sm:$0xff]  }
 0x14d   : > { %v1612_v24 = vpop.f32.mrf.mxu1  ;;  %v1585_v25 = vpop.f32.mrf.mxu0  ;;  %1733 = vmatprep.subr.bf16.mxu1 %v1916_v20 }
 0x14e   : > { %v1586_v38 = vadd.f32 %v1585_v25, %v1584_v23  ;;  %v972_v43 = vadd.f32 %v1611_v37, %v923_v36  ;;  %v1541_v23 = vld [vmem:[%s2376_s4] ss:$0 sm:$0xff] }
 0x14f   : > { %v1587_v26 = vpop.f32.mrf.mxu0  ;;  %v1613_v27 = vpop.f32.mrf.mxu1  ;;  %v1550_v36 = vld [vmem:[%s2378_s6] ss:$0 sm:$0xff] }
 0x150   : > { %v926_v44 = vadd.f32 %v1586_v38, %v1470_v33  ;;  %v1614_v45 = vadd.f32 %v1613_v27, %v1612_v24  ;;  %1734 = vmatpush3.bf16.msra.mxu1 %v1916_v20 }
 0x151   : > { %v1615_v28 = vpop.f32.mrf.mxu1  ;;  %v1588_v29 = vpop.f32.mrf.mxu0 }
 0x152   : > { %v1589_v41 = vadd.f32 %v1588_v29, %v1587_v26  ;;  %v975_v54 = vadd.f32 %v1614_v45, %v926_v44 }
 0x153   : > { %v1616_v30 = vpop.f32.mrf.mxu1  ;;  %v1590_v31 = vpop.f32.mrf.mxu0 }
 0x154   : > { %v931_v51 = vadd.f32 %v1589_v41, %v1470_v33  ;;  %v1617_v52 = vadd.f32 %v1616_v30, %v1615_v28 }
 0x155   : > { %v1618_v34 = vpop.f32.mrf.mxu1  ;;  %v1591_v35 = vpop.f32.mrf.mxu0 }
 0x156   : > { %v1592_v55 = vadd.f32 %v1591_v35, %v1590_v31  ;;  %v980_v62 = vadd.f32 %v1617_v52, %v931_v51 }
 0x157   : > { %v1619_v40 = vpop.f32.mrf.mxu1 }
 0x158   : > { %v934_v0 = vadd.f32 %v1592_v55, %v1470_v33  ;;  %v1620_v1 = vadd.f32 %v1619_v40, %v1618_v34 }
 0x15a   : > { %v983_v9 = vadd.f32 %v1620_v1, %v934_v0 }
 0x167   : > { %v1637_v39 = vpop.f32.mrf.mxu0 }
 0x169   : > { %v1638_v42 = vpop.f32.mrf.mxu0  ;;  %v1697_v47 = vpop.f32.mrf.mxu1 }
 0x16a   : > { %v1639_v46 = vadd.f32 %v1638_v42, %v1637_v39 }
 0x16b   : > { %v1640_v48 = vpop.f32.mrf.mxu0  ;;  %v1069_v50 = vpop.f32.mrf.mxu1 }
 0x16c   : > { %v1021_v49 = vadd.f32 %v1639_v46, %v972_v43 }
 0x16d   : > { %v1641_v53 = vpop.f32.mrf.mxu0  ;;  %v1698_v57 = vpop.f32.mrf.mxu1 }
 0x16e   : > { %v1642_v56 = vadd.f32 %v1641_v53, %v1640_v48  ;;  %v1070_v59 = vadd.f32 %v1069_v50, %v1021_v49 }
 0x16f   : > { %v1643_v58 = vpop.f32.mrf.mxu0  ;;  %v1072_v61 = vpop.f32.mrf.mxu1 }
 0x170   : > { %v1024_v60 = vadd.f32 %v1642_v56, %v975_v54  ;;  %v1084_v5 = vmax.f32 %v1070_v59, 0.0 }
 0x171   : > { %v1644_v63 = vpop.f32.mrf.mxu0 }
 0x172   : > { %v1645_v2 = vadd.f32 %v1644_v63, %v1643_v58  ;;  %v1073_v3 = vadd.f32 %v1072_v61, %v1024_v60 }
 0x173   : > { %v1646_v4 = vpop.f32.mrf.mxu0 }
 0x174   : > { %v1029_v6 = vadd.f32 %v1645_v2, %v980_v62  ;;  %v1085_v7 = vmax.f32 %v1073_v3, 0.0 }
 0x175   : > { %v1647_v8 = vpop.f32.mrf.mxu0 }
 0x176   : > { %v1088_v10 = vpack.c.bf16 %v1085_v7, %v1084_v5  ;;  %v1648_v11 = vadd.f32 %v1647_v8, %v1646_v4  ;;  %v1078_v12 = vadd.f32 %v1697_v47, %v1029_v6 }
 0x178   : > { %v1032_v13 = vadd.f32 %v1648_v11, %v983_v9  ;;  %1715 = vmatprep.mubr.bf16.mxu0 %v1088_v10  ;;  %v1086_v15 = vmax.f32 %v1078_v12, 0.0 }
 0x17a   : > { %v1081_v14 = vadd.f32 %v1698_v57, %v1032_v13 }
 0x17c   : > { %v1087_v16 = vmax.f32 %v1081_v14, 0.0 }
 0x17e   : > { %v1089_v17 = vpack.c.bf16 %v1087_v16, %v1086_v15 }
 0x180   : > { %1716 = vmatmul.mubr.bf16.vlgmr.msra.gmra.mxu0 %v1089_v17 }
 0x240   : > { %v1717_v21 = vpop.f32.mrf.mxu0 }
 0x241   : > { %v1204_v27 = vadd.f32 %v1717_v21, %v1541_v23 }
 0x242   : > { %v1195_v22 = vpop.f32.mrf.mxu0 }
 0x243   : > { %v1196_v25 = vadd.f32 %v1541_v23, %v1195_v22  ;;  %v1212_v33 = vmax.f32 %v1204_v27, 0.0 }
 0x244   : > { %v1718_v24 = vpop.f32.mrf.mxu0 }
 0x245   : > { %v1207_v26 = vadd.f32 %v1718_v24, %v1541_v23  ;;  %v1210_v31 = vmax.f32 %v1196_v25, 0.0 }
 0x246   : > { %v1198_v28 = vpop.f32.mrf.mxu0 }
 0x247   : > { %v1199_v29 = vadd.f32 %v1541_v23, %v1198_v28  ;;  %v1213_v30 = vmax.f32 %v1207_v26, 0.0 }
 0x249   : > { %v1211_v32 = vmax.f32 %v1199_v29, 0.0  ;;  %v1215_v35 = vpack.c.bf16 %v1213_v30, %v1212_v33 }
 0x24b   : > { %v1214_v34 = vpack.c.bf16 %v1211_v32, %v1210_v31 }
 0x24d   : > { %1735 = vmatprep.mubr.bf16.mxu1 %v1214_v34 }
 0x24e   : > { %1736 = vmatmul.mubr.bf16.vlgmr.msra.gmra.mxu1 %v1215_v35 }
 0x30e   : > { %v1737_v37 = vpop.f32.mrf.mxu1 }
 0x30f   : > { %v1330_v38 = vadd.f32 %v1737_v37, %v1550_v36 }
 0x310   : > { %v1321_v39 = vpop.f32.mrf.mxu1 }
 0x311   : > { %1338 = vst [vmem:[%s341_s10 + $0x10] sm:$0xff] %v1330_v38  ;;  %v1322_v40 = vadd.f32 %v1550_v36, %v1321_v39 }
 0x312   : > { %v1738_v41 = vpop.f32.mrf.mxu1 }
 0x313   : > { %1336 = vst [vmem:[%s341_s10] sm:$0xff] %v1322_v40  ;;  %v1333_v42 = vadd.f32 %v1738_v41, %v1550_v36 }
 0x314   : > { %v1324_v43 = vpop.f32.mrf.mxu1 }
 0x315   : > { %1339 = vst [vmem:[%s341_s10 + $0x18] sm:$0xff] %v1333_v42  ;;  %v1325_v44 = vadd.f32 %v1550_v36, %v1324_v43 }
 0x317   : > { %1337 = vst [vmem:[%s341_s10 + $0x8] sm:$0xff] %v1325_v44 }
 0x318   : > { %2036 = shalt.err (!%p2033_p9)
}
 0x319   : > { %s2037_s29 = scalar_lea.hbm %s2330_s19, 512  ;;  %s2041_s16 = scalar_lea.hbm %s2379_s7, 2048 }
 0x31a   : > { %p2038_p1 = scmp.ne.s32.totalorder %s2330_s19, %s2037_s29  ;;  %p2042_p10 = scmp.lt.s32.totalorder %s2330_s19, %s2379_s7 }
 0x31b   : > { %p2043_p12 = scmp.lt.s32.totalorder %s2041_s16, %s2037_s29 }
 0x31c   : > { %p2039_p8 = pnand %p2038_p1, %p2399_p6 }
 0x31d   : > { %p2044_p2 = por %p2043_p12, %p2042_p10 }
 0x31e   : > { %p2040_p5 = pneg %p2039_p8 }
 0x320   : > { %p2045_p4 = pnand %p2044_p2, %p2040_p5 }
 0x322   : > { %2048 = shalt.err (!%p2045_p4)
}
 0x323   : > { %s2106_s15 = smov 128   ;;  %s2107_s18 = smov 8  }
 0x324   : > { %1756 = dma.vmem_to_hbm [thread:$0]  (%p2399_p6), %s2325_s12, 512, %s2330_s19, %s1341_s21, %s2106_s15, %s2106_s15, %s2107_s18  }
 0x325 PF: > { %p1783_p11 = scmp.ge.s32.totalorder %s2095_s27, 2  ;;  %s1369_s30 = sand.u32 1, %s2083_s24  }
 0x326   : > { %p2400_p13 = scmp.ne.s32.totalorder %s2386_s8, 0  ;;  %s1370_s28 = scalar_lea.sflag [#allocation4], %s1369_s30 }
 0x328   : > { %p1773_p3 = pnand %p1783_p11, %p2400_p13 }
 0x32a   : > { %p1774_p0 = pneg %p1773_p3 }
 0x32c   : > { %2078 = dma.done.wait (%p1774_p0), %s1370_s28, 512  }
 0x32d   : > { %2080 = vsyncadd (%p1774_p0), %s1370_s28, 4294966784  ;;  %p22_p7 = scmp.ge.s32.totalorder %s2227_s14, 6   ;;  %s2401_s24 = smov %s2087_s25 }
 0x32e   : > { %s2402_s25 = smov %s2091_s26  ;;  %s2403_s26 = smov %s2237_s17 }
 0x32f   : > { %s2404_s27 = smov %s2227_s14  ;;  %24 = sbr.rel (!%p22_p7) target bundleno = 9 (0x9), region = 105 }
 0x334   :  { %1375 = vsyncpa [#allocation3], 1 }
 0x335   :  { %1377 = vsyncpa [#allocation3 + $0x1], 1 }
 0x336   :  { %1378 = vsyncpa [#allocation6], 1 }
 0x337   :  { %1379 = vsyncpa [#allocation9], 1 }
 0x338   :  { %1380 = vsyncpa [#allocation4], 1 }
 0x339   :  { %1382 = vsyncpa [#allocation4 + $0x1], 1 }

</bundles_post_ra>
